<compile_context>
chip_gen: v7x
topology: tpu7x:2x2x1
jax: 0.10.0
libtpu: 0.0.40
codegen_flags: <defaults>
</compile_context>

<pallas_src>
import jax
import jax.numpy as jnp
from jax.experimental import pallas as pl
from jax.experimental.pallas import tpu as pltpu


def lstm_classifier_kernel(x2d_ref, wih_ref, whh_ref, b_ref,
                           w1_ref, b1_ref, w2_ref, b2_ref,
                           out_ref, xw_ref):
    B = out_ref.shape[0]            # padded batch (multiple of 8)
    T = x2d_ref.shape[0] // B       # static sequence length
    H = whh_ref.shape[0]            # real hidden size
    Gp = whh_ref.shape[1] // 4      # lane-aligned per-gate stride (multiple of 128)

    # (1) Input projection + bias hoisted off the serial chain:
    #     one (T*B, F) @ (F, 4*Gp) matmul, staged in VMEM scratch.
    xw_ref[...] = (jnp.dot(x2d_ref[...], wih_ref[...],
                           preferred_element_type=jnp.float32) + b_ref[...])

    whh = whh_ref[...]              # (H, 4*Gp) — small, keep resident

    # (2)+(3) h/c carried as values (vregs), recurrence fully unrolled.
    h = jnp.zeros((B, H), jnp.float32)
    c = jnp.zeros((B, H), jnp.float32)
    for t in range(T):
        gates = xw_ref[t * B:(t + 1) * B, :] + jnp.dot(
            h, whh, preferred_element_type=jnp.float32)       # (B, 4*Gp)
        # (4) every gate block starts on a 128-lane boundary -> the slices
        #     below are lane-offset-0 sub-vreg reads, no XLU rotations.
        i_g = jax.nn.sigmoid(gates[:, 0 * Gp:0 * Gp + H])
        f_g = jax.nn.sigmoid(gates[:, 1 * Gp:1 * Gp + H])
        g_g = jnp.tanh(gates[:, 2 * Gp:2 * Gp + H])
        o_g = jax.nn.sigmoid(gates[:, 3 * Gp:3 * Gp + H])
        c = f_g * c + i_g * g_g
        h = o_g * jnp.tanh(c)

    # Classifier head on the final hidden state (== lstm_output[:, -1, :]).
    # Dropout is identity in eval mode.
    z = jnp.maximum(jnp.dot(h, w1_ref[...], preferred_element_type=jnp.float32)
                    + b1_ref[...], 0.0)
    out_ref[...] = (jnp.dot(z, w2_ref[...], preferred_element_type=jnp.float32)
                    + b2_ref[...]).astype(out_ref.dtype)


def _pad_gate_cols(w, H, Gp):
    """(…, 4H) -> (…, 4*Gp): gate block g moved to columns [g*Gp, g*Gp+H)."""
    out = jnp.zeros(w.shape[:-1] + (4 * Gp,), w.dtype)
    for g in range(4):
        out = out.at[..., g * Gp:g * Gp + H].set(w[..., g * H:(g + 1) * H])
    return out


def lstm_action_classifier(x_btf, params):
    """x_btf: (B, T, F) float32 batch-first input (matches the PyTorch module)."""
    B, T, F = x_btf.shape
    H = params["w_hh"].shape[0]
    C = params["b2"].shape[-1]

    LANE, SUB = 128, 8
    Gp = ((H + LANE - 1) // LANE) * LANE       # per-gate lane-aligned stride
    Bp = ((B + SUB - 1) // SUB) * SUB          # batch padded to f32 sublane tile

    # Pad batch to the sublane tile, go time-major, flatten so the input
    # projection inside the kernel is a single matmul.
    x_p = jnp.zeros((Bp, T, F), x_btf.dtype).at[:B].set(x_btf)
    x_2d = jnp.transpose(x_p, (1, 0, 2)).reshape(T * Bp, F)

    w_ih = _pad_gate_cols(params["w_ih"], H, Gp)   # (F, 4*Gp)
    w_hh = _pad_gate_cols(params["w_hh"], H, Gp)   # (H, 4*Gp)
    b = _pad_gate_cols(params["b"], H, Gp)         # (1, 4*Gp)

    vmem = pl.BlockSpec(memory_space=pltpu.MemorySpace.VMEM)

    out = pl.pallas_call(
        lstm_classifier_kernel,
        out_shape=jax.ShapeDtypeStruct((Bp, C), jnp.float32),
        in_specs=[vmem] * 8,
        out_specs=vmem,
        scratch_shapes=[pltpu.VMEM((T * Bp, 4 * Gp), jnp.float32)],  # staged x@W_ih+b
    )(x_2d, w_ih, w_hh, b,
      params["w1"], params["b1"], params["w2"], params["b2"])
    return out[:B]


def make_params(key, feature_size, hidden_size, num_classes):
    """Deterministic synthetic parameters matching nn.LSTM / nn.Linear shapes."""
    ks = jax.random.split(key, 8)
    H, F, C = hidden_size, feature_size, num_classes
    Hm = H // 2
    scale = 0.1
    # PyTorch stores weight_ih as (4H, F); we pre-transpose to (F, 4H), etc.
    w_ih = scale * jax.random.normal(ks[0], (F, 4 * H), jnp.float32)
    w_hh = scale * jax.random.normal(ks[1], (H, 4 * H), jnp.float32)
    b_ih = scale * jax.random.normal(ks[2], (1, 4 * H), jnp.float32)
    b_hh = scale * jax.random.normal(ks[3], (1, 4 * H), jnp.float32)
    w1 = scale * jax.random.normal(ks[4], (H, Hm), jnp.float32)
    b1 = scale * jax.random.normal(ks[5], (1, Hm), jnp.float32)
    w2 = scale * jax.random.normal(ks[6], (Hm, C), jnp.float32)
    b2 = scale * jax.random.normal(ks[7], (1, C), jnp.float32)
    return {"w_ih": w_ih, "w_hh": w_hh, "b": b_ih + b_hh,
            "w1": w1, "b1": b1, "w2": w2, "b2": b2}


def reference_forward(x_btf, params):
    """Pure-JAX reference reproducing the PyTorch forward (eval mode)."""
    B, T, F = x_btf.shape
    H = params["w_hh"].shape[0]
    h = jnp.zeros((B, H), jnp.float32)
    c = jnp.zeros((B, H), jnp.float32)
    for t in range(T):
        gates = x_btf[:, t, :] @ params["w_ih"] + h @ params["w_hh"] + params["b"]
        i_g = jax.nn.sigmoid(gates[:, 0 * H:1 * H])
        f_g = jax.nn.sigmoid(gates[:, 1 * H:2 * H])
        g_g = jnp.tanh(gates[:, 2 * H:3 * H])
        o_g = jax.nn.sigmoid(gates[:, 3 * H:4 * H])
        c = f_g * c + i_g * g_g
        h = o_g * jnp.tanh(c)
    z = jnp.maximum(h @ params["w1"] + params["b1"], 0.0)
    return z @ params["w2"] + params["b2"]


if __name__ == "__main__":
    B, T, F = 2, 8, 16          # batch, num_feature_vectors (seq), feature_vector_size
    H, C = 32, 8                # hidden_size, num_classes

    key = jax.random.PRNGKey(0)
    k_x, k_p = jax.random.split(key)
    x = jax.random.normal(k_x, (B, T, F), jnp.float32)
    params = make_params(k_p, F, H, C)

    out = lstm_action_classifier(x, params)
    out = jax.block_until_ready(out)

    ref = reference_forward(x, params)
    assert out.shape == (B, C)
    assert jnp.allclose(out, ref, atol=1e-4, rtol=1e-4), "mismatch vs JAX reference"

    print("KERNEL_OK")
</pallas_src>

<mosaic_0001>
module attributes {stable_mosaic.version = 11 : i64} {
  func.func @lstm_classifier_kernel(%arg0: memref<64x16xf32, #tpu.memory_space<vmem>>, %arg1: memref<16x512xf32, #tpu.memory_space<vmem>>, %arg2: memref<32x512xf32, #tpu.memory_space<vmem>>, %arg3: memref<1x512xf32, #tpu.memory_space<vmem>>, %arg4: memref<32x16xf32, #tpu.memory_space<vmem>>, %arg5: memref<1x16xf32, #tpu.memory_space<vmem>>, %arg6: memref<16x8xf32, #tpu.memory_space<vmem>>, %arg7: memref<1x8xf32, #tpu.memory_space<vmem>>, %arg8: memref<8x8xf32, #tpu.memory_space<vmem>>, %arg9: memref<64x512xf32, #tpu.memory_space<vmem>>) attributes {dimension_semantics = [], scalar_prefetch = 0 : i64, scratch_operands = 1 : i64, tpu.core_type = #tpu.core_type<tc>} {
    %c0 = arith.constant 0 : index
    %c0_0 = arith.constant 0 : index
    %0 = vector.load %arg0[%c0, %c0_0] : memref<64x16xf32, #tpu.memory_space<vmem>>, vector<64x16xf32>
    %c0_1 = arith.constant 0 : index
    %c0_2 = arith.constant 0 : index
    %1 = vector.load %arg1[%c0_1, %c0_2] : memref<16x512xf32, #tpu.memory_space<vmem>>, vector<16x512xf32>
    %cst = arith.constant dense<0.000000e+00> : vector<64x512xf32>
    %2 = tpu.matmul %0, %1, %cst {dimension_numbers = #tpu.dot_dimension_numbers<[1], [0], [0], [1], [0, 0, 1, 1], [], []>} : vector<64x16xf32>, vector<16x512xf32>, vector<64x512xf32> -> vector<64x512xf32>
    %c0_3 = arith.constant 0 : index
    %c0_4 = arith.constant 0 : index
    %3 = vector.load %arg3[%c0_3, %c0_4] : memref<1x512xf32, #tpu.memory_space<vmem>>, vector<1x512xf32>
    %4 = vector.broadcast %3 : vector<1x512xf32> to vector<64x512xf32>
    %5 = arith.addf %2, %4 : vector<64x512xf32>
    %c0_5 = arith.constant 0 : index
    %c0_6 = arith.constant 0 : index
    %6 = vector.load %arg9[%c0_5, %c0_6] : memref<64x512xf32, #tpu.memory_space<vmem>>, vector<64x512xf32>
    tpu.vector_store %arg9[%c0_5, %c0_6], %5 {strides = array<i32>} : memref<64x512xf32, #tpu.memory_space<vmem>>, vector<64x512xf32>,
    %c0_7 = arith.constant 0 : index
    %c0_8 = arith.constant 0 : index
    %7 = vector.load %arg2[%c0_7, %c0_8] : memref<32x512xf32, #tpu.memory_space<vmem>>, vector<32x512xf32>
    %cst_9 = arith.constant 0.000000e+00 : f32
    %8 = vector.broadcast %cst_9 : f32 to vector<8x32xf32>
    %cst_10 = arith.constant 0.000000e+00 : f32
    %9 = vector.broadcast %cst_10 : f32 to vector<8x32xf32>
    %c0_11 = arith.constant 0 : index
    %c0_12 = arith.constant 0 : index
    %10 = vector.load %arg9[%c0_11, %c0_12] : memref<64x512xf32, #tpu.memory_space<vmem>>, vector<8x512xf32>
    %cst_13 = arith.constant dense<0.000000e+00> : vector<8x512xf32>
    %11 = tpu.matmul %8, %7, %cst_13 {dimension_numbers = #tpu.dot_dimension_numbers<[1], [0], [0], [1], [0, 0, 1, 1], [], []>} : vector<8x32xf32>, vector<32x512xf32>, vector<8x512xf32> -> vector<8x512xf32>
    %12 = arith.addf %10, %11 : vector<8x512xf32>
    %13 = vector.extract_strided_slice %12 {offsets = [0, 0], sizes = [8, 32], strides = [1, 1]} : vector<8x512xf32> to vector<8x32xf32>
    %14 = arith.negf %13 : vector<8x32xf32>
    %15 = math.exp %14 : vector<8x32xf32>
    %cst_14 = arith.constant 1.000000e+00 : f32
    %16 = vector.broadcast %cst_14 : f32 to vector<8x32xf32>
    %17 = arith.addf %16, %15 : vector<8x32xf32>
    %18 = arith.divf %16, %17 : vector<8x32xf32>
    %19 = vector.extract_strided_slice %12 {offsets = [0, 128], sizes = [8, 32], strides = [1, 1]} : vector<8x512xf32> to vector<8x32xf32>
    %20 = arith.negf %19 : vector<8x32xf32>
    %21 = math.exp %20 : vector<8x32xf32>
    %cst_15 = arith.constant 1.000000e+00 : f32
    %22 = vector.broadcast %cst_15 : f32 to vector<8x32xf32>
    %23 = arith.addf %22, %21 : vector<8x32xf32>
    %24 = arith.divf %22, %23 : vector<8x32xf32>
    %25 = vector.extract_strided_slice %12 {offsets = [0, 256], sizes = [8, 32], strides = [1, 1]} : vector<8x512xf32> to vector<8x32xf32>
    %26 = math.tanh %25 : vector<8x32xf32>
    %27 = vector.extract_strided_slice %12 {offsets = [0, 384], sizes = [8, 32], strides = [1, 1]} : vector<8x512xf32> to vector<8x32xf32>
    %28 = arith.negf %27 : vector<8x32xf32>
    %29 = math.exp %28 : vector<8x32xf32>
    %cst_16 = arith.constant 1.000000e+00 : f32
    %30 = vector.broadcast %cst_16 : f32 to vector<8x32xf32>
    %31 = arith.addf %30, %29 : vector<8x32xf32>
    %32 = arith.divf %30, %31 : vector<8x32xf32>
    %33 = arith.mulf %24, %9 : vector<8x32xf32>
    %34 = arith.mulf %18, %26 : vector<8x32xf32>
    %35 = arith.addf %33, %34 : vector<8x32xf32>
    %36 = math.tanh %35 : vector<8x32xf32>
    %37 = arith.mulf %32, %36 : vector<8x32xf32>
    %c8 = arith.constant 8 : index
    %c0_17 = arith.constant 0 : index
    %38 = vector.load %arg9[%c8, %c0_17] : memref<64x512xf32, #tpu.memory_space<vmem>>, vector<8x512xf32>
    %cst_18 = arith.constant dense<0.000000e+00> : vector<8x512xf32>
    %39 = tpu.matmul %37, %7, %cst_18 {dimension_numbers = #tpu.dot_dimension_numbers<[1], [0], [0], [1], [0, 0, 1, 1], [], []>} : vector<8x32xf32>, vector<32x512xf32>, vector<8x512xf32> -> vector<8x512xf32>
    %40 = arith.addf %38, %39 : vector<8x512xf32>
    %41 = vector.extract_strided_slice %40 {offsets = [0, 0], sizes = [8, 32], strides = [1, 1]} : vector<8x512xf32> to vector<8x32xf32>
    %42 = arith.negf %41 : vector<8x32xf32>
    %43 = math.exp %42 : vector<8x32xf32>
    %cst_19 = arith.constant 1.000000e+00 : f32
    %44 = vector.broadcast %cst_19 : f32 to vector<8x32xf32>
    %45 = arith.addf %44, %43 : vector<8x32xf32>
    %46 = arith.divf %44, %45 : vector<8x32xf32>
    %47 = vector.extract_strided_slice %40 {offsets = [0, 128], sizes = [8, 32], strides = [1, 1]} : vector<8x512xf32> to vector<8x32xf32>
    %48 = arith.negf %47 : vector<8x32xf32>
    %49 = math.exp %48 : vector<8x32xf32>
    %cst_20 = arith.constant 1.000000e+00 : f32
    %50 = vector.broadcast %cst_20 : f32 to vector<8x32xf32>
    %51 = arith.addf %50, %49 : vector<8x32xf32>
    %52 = arith.divf %50, %51 : vector<8x32xf32>
    %53 = vector.extract_strided_slice %40 {offsets = [0, 256], sizes = [8, 32], strides = [1, 1]} : vector<8x512xf32> to vector<8x32xf32>
    %54 = math.tanh %53 : vector<8x32xf32>
    %55 = vector.extract_strided_slice %40 {offsets = [0, 384], sizes = [8, 32], strides = [1, 1]} : vector<8x512xf32> to vector<8x32xf32>
    %56 = arith.negf %55 : vector<8x32xf32>
    %57 = math.exp %56 : vector<8x32xf32>
    %cst_21 = arith.constant 1.000000e+00 : f32
    %58 = vector.broadcast %cst_21 : f32 to vector<8x32xf32>
    %59 = arith.addf %58, %57 : vector<8x32xf32>
    %60 = arith.divf %58, %59 : vector<8x32xf32>
    %61 = arith.mulf %52, %35 : vector<8x32xf32>
    %62 = arith.mulf %46, %54 : vector<8x32xf32>
    %63 = arith.addf %61, %62 : vector<8x32xf32>
    %64 = math.tanh %63 : vector<8x32xf32>
    %65 = arith.mulf %60, %64 : vector<8x32xf32>
    %c16 = arith.constant 16 : index
    %c0_22 = arith.constant 0 : index
    %66 = vector.load %arg9[%c16, %c0_22] : memref<64x512xf32, #tpu.memory_space<vmem>>, vector<8x512xf32>
    %cst_23 = arith.constant dense<0.000000e+00> : vector<8x512xf32>
    %67 = tpu.matmul %65, %7, %cst_23 {dimension_numbers = #tpu.dot_dimension_numbers<[1], [0], [0], [1], [0, 0, 1, 1], [], []>} : vector<8x32xf32>, vector<32x512xf32>, vector<8x512xf32> -> vector<8x512xf32>
    %68 = arith.addf %66, %67 : vector<8x512xf32>
    %69 = vector.extract_strided_slice %68 {offsets = [0, 0], sizes = [8, 32], strides = [1, 1]} : vector<8x512xf32> to vector<8x32xf32>
    %70 = arith.negf %69 : vector<8x32xf32>
    %71 = math.exp %70 : vector<8x32xf32>
    %cst_24 = arith.constant 1.000000e+00 : f32
    %72 = vector.broadcast %cst_24 : f32 to vector<8x32xf32>
    %73 = arith.addf %72, %71 : vector<8x32xf32>
    %74 = arith.divf %72, %73 : vector<8x32xf32>
    %75 = vector.extract_strided_slice %68 {offsets = [0, 128], sizes = [8, 32], strides = [1, 1]} : vector<8x512xf32> to vector<8x32xf32>
    %76 = arith.negf %75 : vector<8x32xf32>
    %77 = math.exp %76 : vector<8x32xf32>
    %cst_25 = arith.constant 1.000000e+00 : f32
    %78 = vector.broadcast %cst_25 : f32 to vector<8x32xf32>
    %79 = arith.addf %78, %77 : vector<8x32xf32>
    %80 = arith.divf %78, %79 : vector<8x32xf32>
    %81 = vector.extract_strided_slice %68 {offsets = [0, 256], sizes = [8, 32], strides = [1, 1]} : vector<8x512xf32> to vector<8x32xf32>
    %82 = math.tanh %81 : vector<8x32xf32>
    %83 = vector.extract_strided_slice %68 {offsets = [0, 384], sizes = [8, 32], strides = [1, 1]} : vector<8x512xf32> to vector<8x32xf32>
    %84 = arith.negf %83 : vector<8x32xf32>
    %85 = math.exp %84 : vector<8x32xf32>
    %cst_26 = arith.constant 1.000000e+00 : f32
    %86 = vector.broadcast %cst_26 : f32 to vector<8x32xf32>
    %87 = arith.addf %86, %85 : vector<8x32xf32>
    %88 = arith.divf %86, %87 : vector<8x32xf32>
    %89 = arith.mulf %80, %63 : vector<8x32xf32>
    %90 = arith.mulf %74, %82 : vector<8x32xf32>
    %91 = arith.addf %89, %90 : vector<8x32xf32>
    %92 = math.tanh %91 : vector<8x32xf32>
    %93 = arith.mulf %88, %92 : vector<8x32xf32>
    %c24 = arith.constant 24 : index
    %c0_27 = arith.constant 0 : index
    %94 = vector.load %arg9[%c24, %c0_27] : memref<64x512xf32, #tpu.memory_space<vmem>>, vector<8x512xf32>
    %cst_28 = arith.constant dense<0.000000e+00> : vector<8x512xf32>
    %95 = tpu.matmul %93, %7, %cst_28 {dimension_numbers = #tpu.dot_dimension_numbers<[1], [0], [0], [1], [0, 0, 1, 1], [], []>} : vector<8x32xf32>, vector<32x512xf32>, vector<8x512xf32> -> vector<8x512xf32>
    %96 = arith.addf %94, %95 : vector<8x512xf32>
    %97 = vector.extract_strided_slice %96 {offsets = [0, 0], sizes = [8, 32], strides = [1, 1]} : vector<8x512xf32> to vector<8x32xf32>
    %98 = arith.negf %97 : vector<8x32xf32>
    %99 = math.exp %98 : vector<8x32xf32>
    %cst_29 = arith.constant 1.000000e+00 : f32
    %100 = vector.broadcast %cst_29 : f32 to vector<8x32xf32>
    %101 = arith.addf %100, %99 : vector<8x32xf32>
    %102 = arith.divf %100, %101 : vector<8x32xf32>
    %103 = vector.extract_strided_slice %96 {offsets = [0, 128], sizes = [8, 32], strides = [1, 1]} : vector<8x512xf32> to vector<8x32xf32>
    %104 = arith.negf %103 : vector<8x32xf32>
    %105 = math.exp %104 : vector<8x32xf32>
    %cst_30 = arith.constant 1.000000e+00 : f32
    %106 = vector.broadcast %cst_30 : f32 to vector<8x32xf32>
    %107 = arith.addf %106, %105 : vector<8x32xf32>
    %108 = arith.divf %106, %107 : vector<8x32xf32>
    %109 = vector.extract_strided_slice %96 {offsets = [0, 256], sizes = [8, 32], strides = [1, 1]} : vector<8x512xf32> to vector<8x32xf32>
    %110 = math.tanh %109 : vector<8x32xf32>
    %111 = vector.extract_strided_slice %96 {offsets = [0, 384], sizes = [8, 32], strides = [1, 1]} : vector<8x512xf32> to vector<8x32xf32>
    %112 = arith.negf %111 : vector<8x32xf32>
    %113 = math.exp %112 : vector<8x32xf32>
    %cst_31 = arith.constant 1.000000e+00 : f32
    %114 = vector.broadcast %cst_31 : f32 to vector<8x32xf32>
    %115 = arith.addf %114, %113 : vector<8x32xf32>
    %116 = arith.divf %114, %115 : vector<8x32xf32>
    %117 = arith.mulf %108, %91 : vector<8x32xf32>
    %118 = arith.mulf %102, %110 : vector<8x32xf32>
    %119 = arith.addf %117, %118 : vector<8x32xf32>
    %120 = math.tanh %119 : vector<8x32xf32>
    %121 = arith.mulf %116, %120 : vector<8x32xf32>
    %c32 = arith.constant 32 : index
    %c0_32 = arith.constant 0 : index
    %122 = vector.load %arg9[%c32, %c0_32] : memref<64x512xf32, #tpu.memory_space<vmem>>, vector<8x512xf32>
    %cst_33 = arith.constant dense<0.000000e+00> : vector<8x512xf32>
    %123 = tpu.matmul %121, %7, %cst_33 {dimension_numbers = #tpu.dot_dimension_numbers<[1], [0], [0], [1], [0, 0, 1, 1], [], []>} : vector<8x32xf32>, vector<32x512xf32>, vector<8x512xf32> -> vector<8x512xf32>
    %124 = arith.addf %122, %123 : vector<8x512xf32>
    %125 = vector.extract_strided_slice %124 {offsets = [0, 0], sizes = [8, 32], strides = [1, 1]} : vector<8x512xf32> to vector<8x32xf32>
    %126 = arith.negf %125 : vector<8x32xf32>
    %127 = math.exp %126 : vector<8x32xf32>
    %cst_34 = arith.constant 1.000000e+00 : f32
    %128 = vector.broadcast %cst_34 : f32 to vector<8x32xf32>
    %129 = arith.addf %128, %127 : vector<8x32xf32>
    %130 = arith.divf %128, %129 : vector<8x32xf32>
    %131 = vector.extract_strided_slice %124 {offsets = [0, 128], sizes = [8, 32], strides = [1, 1]} : vector<8x512xf32> to vector<8x32xf32>
    %132 = arith.negf %131 : vector<8x32xf32>
    %133 = math.exp %132 : vector<8x32xf32>
    %cst_35 = arith.constant 1.000000e+00 : f32
    %134 = vector.broadcast %cst_35 : f32 to vector<8x32xf32>
    %135 = arith.addf %134, %133 : vector<8x32xf32>
    %136 = arith.divf %134, %135 : vector<8x32xf32>
    %137 = vector.extract_strided_slice %124 {offsets = [0, 256], sizes = [8, 32], strides = [1, 1]} : vector<8x512xf32> to vector<8x32xf32>
    %138 = math.tanh %137 : vector<8x32xf32>
    %139 = vector.extract_strided_slice %124 {offsets = [0, 384], sizes = [8, 32], strides = [1, 1]} : vector<8x512xf32> to vector<8x32xf32>
    %140 = arith.negf %139 : vector<8x32xf32>
    %141 = math.exp %140 : vector<8x32xf32>
    %cst_36 = arith.constant 1.000000e+00 : f32
    %142 = vector.broadcast %cst_36 : f32 to vector<8x32xf32>
    %143 = arith.addf %142, %141 : vector<8x32xf32>
    %144 = arith.divf %142, %143 : vector<8x32xf32>
    %145 = arith.mulf %136, %119 : vector<8x32xf32>
    %146 = arith.mulf %130, %138 : vector<8x32xf32>
    %147 = arith.addf %145, %146 : vector<8x32xf32>
    %148 = math.tanh %147 : vector<8x32xf32>
    %149 = arith.mulf %144, %148 : vector<8x32xf32>
    %c40 = arith.constant 40 : index
    %c0_37 = arith.constant 0 : index
    %150 = vector.load %arg9[%c40, %c0_37] : memref<64x512xf32, #tpu.memory_space<vmem>>, vector<8x512xf32>
    %cst_38 = arith.constant dense<0.000000e+00> : vector<8x512xf32>
    %151 = tpu.matmul %149, %7, %cst_38 {dimension_numbers = #tpu.dot_dimension_numbers<[1], [0], [0], [1], [0, 0, 1, 1], [], []>} : vector<8x32xf32>, vector<32x512xf32>, vector<8x512xf32> -> vector<8x512xf32>
    %152 = arith.addf %150, %151 : vector<8x512xf32>
    %153 = vector.extract_strided_slice %152 {offsets = [0, 0], sizes = [8, 32], strides = [1, 1]} : vector<8x512xf32> to vector<8x32xf32>
    %154 = arith.negf %153 : vector<8x32xf32>
    %155 = math.exp %154 : vector<8x32xf32>
    %cst_39 = arith.constant 1.000000e+00 : f32
    %156 = vector.broadcast %cst_39 : f32 to vector<8x32xf32>
    %157 = arith.addf %156, %155 : vector<8x32xf32>
    %158 = arith.divf %156, %157 : vector<8x32xf32>
    %159 = vector.extract_strided_slice %152 {offsets = [0, 128], sizes = [8, 32], strides = [1, 1]} : vector<8x512xf32> to vector<8x32xf32>
    %160 = arith.negf %159 : vector<8x32xf32>
    %161 = math.exp %160 : vector<8x32xf32>
    %cst_40 = arith.constant 1.000000e+00 : f32
    %162 = vector.broadcast %cst_40 : f32 to vector<8x32xf32>
    %163 = arith.addf %162, %161 : vector<8x32xf32>
    %164 = arith.divf %162, %163 : vector<8x32xf32>
    %165 = vector.extract_strided_slice %152 {offsets = [0, 256], sizes = [8, 32], strides = [1, 1]} : vector<8x512xf32> to vector<8x32xf32>
    %166 = math.tanh %165 : vector<8x32xf32>
    %167 = vector.extract_strided_slice %152 {offsets = [0, 384], sizes = [8, 32], strides = [1, 1]} : vector<8x512xf32> to vector<8x32xf32>
    %168 = arith.negf %167 : vector<8x32xf32>
    %169 = math.exp %168 : vector<8x32xf32>
    %cst_41 = arith.constant 1.000000e+00 : f32
    %170 = vector.broadcast %cst_41 : f32 to vector<8x32xf32>
    %171 = arith.addf %170, %169 : vector<8x32xf32>
    %172 = arith.divf %170, %171 : vector<8x32xf32>
    %173 = arith.mulf %164, %147 : vector<8x32xf32>
    %174 = arith.mulf %158, %166 : vector<8x32xf32>
    %175 = arith.addf %173, %174 : vector<8x32xf32>
    %176 = math.tanh %175 : vector<8x32xf32>
    %177 = arith.mulf %172, %176 : vector<8x32xf32>
    %c48 = arith.constant 48 : index
    %c0_42 = arith.constant 0 : index
    %178 = vector.load %arg9[%c48, %c0_42] : memref<64x512xf32, #tpu.memory_space<vmem>>, vector<8x512xf32>
    %cst_43 = arith.constant dense<0.000000e+00> : vector<8x512xf32>
    %179 = tpu.matmul %177, %7, %cst_43 {dimension_numbers = #tpu.dot_dimension_numbers<[1], [0], [0], [1], [0, 0, 1, 1], [], []>} : vector<8x32xf32>, vector<32x512xf32>, vector<8x512xf32> -> vector<8x512xf32>
    %180 = arith.addf %178, %179 : vector<8x512xf32>
    %181 = vector.extract_strided_slice %180 {offsets = [0, 0], sizes = [8, 32], strides = [1, 1]} : vector<8x512xf32> to vector<8x32xf32>
    %182 = arith.negf %181 : vector<8x32xf32>
    %183 = math.exp %182 : vector<8x32xf32>
    %cst_44 = arith.constant 1.000000e+00 : f32
    %184 = vector.broadcast %cst_44 : f32 to vector<8x32xf32>
    %185 = arith.addf %184, %183 : vector<8x32xf32>
    %186 = arith.divf %184, %185 : vector<8x32xf32>
    %187 = vector.extract_strided_slice %180 {offsets = [0, 128], sizes = [8, 32], strides = [1, 1]} : vector<8x512xf32> to vector<8x32xf32>
    %188 = arith.negf %187 : vector<8x32xf32>
    %189 = math.exp %188 : vector<8x32xf32>
    %cst_45 = arith.constant 1.000000e+00 : f32
    %190 = vector.broadcast %cst_45 : f32 to vector<8x32xf32>
    %191 = arith.addf %190, %189 : vector<8x32xf32>
    %192 = arith.divf %190, %191 : vector<8x32xf32>
    %193 = vector.extract_strided_slice %180 {offsets = [0, 256], sizes = [8, 32], strides = [1, 1]} : vector<8x512xf32> to vector<8x32xf32>
    %194 = math.tanh %193 : vector<8x32xf32>
    %195 = vector.extract_strided_slice %180 {offsets = [0, 384], sizes = [8, 32], strides = [1, 1]} : vector<8x512xf32> to vector<8x32xf32>
    %196 = arith.negf %195 : vector<8x32xf32>
    %197 = math.exp %196 : vector<8x32xf32>
    %cst_46 = arith.constant 1.000000e+00 : f32
    %198 = vector.broadcast %cst_46 : f32 to vector<8x32xf32>
    %199 = arith.addf %198, %197 : vector<8x32xf32>
    %200 = arith.divf %198, %199 : vector<8x32xf32>
    %201 = arith.mulf %192, %175 : vector<8x32xf32>
    %202 = arith.mulf %186, %194 : vector<8x32xf32>
    %203 = arith.addf %201, %202 : vector<8x32xf32>
    %204 = math.tanh %203 : vector<8x32xf32>
    %205 = arith.mulf %200, %204 : vector<8x32xf32>
    %c56 = arith.constant 56 : index
    %c0_47 = arith.constant 0 : index
    %206 = vector.load %arg9[%c56, %c0_47] : memref<64x512xf32, #tpu.memory_space<vmem>>, vector<8x512xf32>
    %cst_48 = arith.constant dense<0.000000e+00> : vector<8x512xf32>
    %207 = tpu.matmul %205, %7, %cst_48 {dimension_numbers = #tpu.dot_dimension_numbers<[1], [0], [0], [1], [0, 0, 1, 1], [], []>} : vector<8x32xf32>, vector<32x512xf32>, vector<8x512xf32> -> vector<8x512xf32>
    %208 = arith.addf %206, %207 : vector<8x512xf32>
    %209 = vector.extract_strided_slice %208 {offsets = [0, 0], sizes = [8, 32], strides = [1, 1]} : vector<8x512xf32> to vector<8x32xf32>
    %210 = arith.negf %209 : vector<8x32xf32>
    %211 = math.exp %210 : vector<8x32xf32>
    %cst_49 = arith.constant 1.000000e+00 : f32
    %212 = vector.broadcast %cst_49 : f32 to vector<8x32xf32>
    %213 = arith.addf %212, %211 : vector<8x32xf32>
    %214 = arith.divf %212, %213 : vector<8x32xf32>
    %215 = vector.extract_strided_slice %208 {offsets = [0, 128], sizes = [8, 32], strides = [1, 1]} : vector<8x512xf32> to vector<8x32xf32>
    %216 = arith.negf %215 : vector<8x32xf32>
    %217 = math.exp %216 : vector<8x32xf32>
    %cst_50 = arith.constant 1.000000e+00 : f32
    %218 = vector.broadcast %cst_50 : f32 to vector<8x32xf32>
    %219 = arith.addf %218, %217 : vector<8x32xf32>
    %220 = arith.divf %218, %219 : vector<8x32xf32>
    %221 = vector.extract_strided_slice %208 {offsets = [0, 256], sizes = [8, 32], strides = [1, 1]} : vector<8x512xf32> to vector<8x32xf32>
    %222 = math.tanh %221 : vector<8x32xf32>
    %223 = vector.extract_strided_slice %208 {offsets = [0, 384], sizes = [8, 32], strides = [1, 1]} : vector<8x512xf32> to vector<8x32xf32>
    %224 = arith.negf %223 : vector<8x32xf32>
    %225 = math.exp %224 : vector<8x32xf32>
    %cst_51 = arith.constant 1.000000e+00 : f32
    %226 = vector.broadcast %cst_51 : f32 to vector<8x32xf32>
    %227 = arith.addf %226, %225 : vector<8x32xf32>
    %228 = arith.divf %226, %227 : vector<8x32xf32>
    %229 = arith.mulf %220, %203 : vector<8x32xf32>
    %230 = arith.mulf %214, %222 : vector<8x32xf32>
    %231 = arith.addf %229, %230 : vector<8x32xf32>
    %232 = math.tanh %231 : vector<8x32xf32>
    %233 = arith.mulf %228, %232 : vector<8x32xf32>
    %c0_52 = arith.constant 0 : index
    %c0_53 = arith.constant 0 : index
    %234 = vector.load %arg4[%c0_52, %c0_53] : memref<32x16xf32, #tpu.memory_space<vmem>>, vector<32x16xf32>
    %cst_54 = arith.constant dense<0.000000e+00> : vector<8x16xf32>
    %235 = tpu.matmul %233, %234, %cst_54 {dimension_numbers = #tpu.dot_dimension_numbers<[1], [0], [0], [1], [0, 0, 1, 1], [], []>} : vector<8x32xf32>, vector<32x16xf32>, vector<8x16xf32> -> vector<8x16xf32>
    %c0_55 = arith.constant 0 : index
    %c0_56 = arith.constant 0 : index
    %236 = vector.load %arg5[%c0_55, %c0_56] : memref<1x16xf32, #tpu.memory_space<vmem>>, vector<1x16xf32>
    %237 = vector.broadcast %236 : vector<1x16xf32> to vector<8x16xf32>
    %238 = arith.addf %235, %237 : vector<8x16xf32>
    %cst_57 = arith.constant 0.000000e+00 : f32
    %239 = vector.broadcast %cst_57 : f32 to vector<8x16xf32>
    %240 = arith.maximumf %238, %239 : vector<8x16xf32>
    %c0_58 = arith.constant 0 : index
    %c0_59 = arith.constant 0 : index
    %241 = vector.load %arg6[%c0_58, %c0_59] : memref<16x8xf32, #tpu.memory_space<vmem>>, vector<16x8xf32>
    %cst_60 = arith.constant dense<0.000000e+00> : vector<8x8xf32>
    %242 = tpu.matmul %240, %241, %cst_60 {dimension_numbers = #tpu.dot_dimension_numbers<[1], [0], [0], [1], [0, 0, 1, 1], [], []>} : vector<8x16xf32>, vector<16x8xf32>, vector<8x8xf32> -> vector<8x8xf32>
    %c0_61 = arith.constant 0 : index
    %c0_62 = arith.constant 0 : index
    %243 = vector.load %arg7[%c0_61, %c0_62] : memref<1x8xf32, #tpu.memory_space<vmem>>, vector<1x8xf32>
    %244 = vector.broadcast %243 : vector<1x8xf32> to vector<8x8xf32>
    %245 = arith.addf %242, %244 : vector<8x8xf32>
    %c0_63 = arith.constant 0 : index
    %c0_64 = arith.constant 0 : index
    %246 = vector.load %arg8[%c0_63, %c0_64] : memref<8x8xf32, #tpu.memory_space<vmem>>, vector<8x8xf32>
    tpu.vector_store %arg8[%c0_63, %c0_64], %245 {strides = array<i32>} : memref<8x8xf32, #tpu.memory_space<vmem>>, vector<8x8xf32>,
    return
  }
}

</mosaic_0001>

<bundles_post_ra>
// kernel: tpu_custom_call.1
= control target key start
LH: loop header
LB: loop body
LE: loop exit
PB: predicated region body
PF: predicated region fallthrough
CT: control target
= control target key end

     0   :  { %13 = vsyncpa [#allocation4], 0  ;;  %s2821_s0 = inlined_call_operand.vmem [shape: f32[64,16], index: 0, kind: input, shape index: {}]   ;;  %s2822_s1 = inlined_call_operand.hbm [shape: f32[16,512], index: 1, kind: input, shape index: {}]   ;;  %s2823_s2 = inlined_call_operand.vmem [shape: f32[32,512], index: 2, kind: input, shape index: {}]   ;;  %s2824_s3 = inlined_call_operand.vmem [shape: f32[1,512], index: 3, kind: input, shape index: {}]   ;;  %s2825_s4 = inlined_call_operand.vmem [shape: f32[32,16], index: 4, kind: input, shape index: {}]   ;;  %s2826_s5 = inlined_call_operand.vmem [shape: f32[1,16], index: 5, kind: input, shape index: {}]   ;;  %s2827_s6 = inlined_call_operand.vmem [shape: f32[16,8], index: 6, kind: input, shape index: {}]   ;;  %s2828_s7 = inlined_call_operand.vmem [shape: f32[1,8], index: 7, kind: input, shape index: {}]   ;;  %s2829_s8 = inlined_call_operand.hbm [shape: f32[8,8], index: 8, kind: output, shape index: {}]  }
   0x1   :  { %14 = vsyncpa [#allocation5], 0  ;;  %s2458_s27 = smov [#allocation3]   ;;  %s2410_s9 = scalar_lea.hbm %s2822_s1, 1024 }
   0x2   :  { %s22_s28 = sshll.u32 %s2458_s27, 4  ;;  %p2411_p0 = scmp.ne.s32.totalorder %s2822_s1, %s2410_s9  ;;  %s23_s28 = int_to_ptr.vmem [resolvable:$true] %s22_s28 }
   0x3   :  { %p2414_p1 = scmp.lt.u32.totalorder %s2410_s9, %s2822_s1 }
   0x5   :  { %p2416_p2 = pnand %p2414_p1, %p2411_p0 }
   0x7   :  { %2419 = shalt.err (!%p2416_p2)
}
   0x8   :  { %s2420_s14 = scalar_lea.vmem %s23_s28, 1024  ;;  %p2425_p4 = scmp.lt.s32.totalorder %s23_s28, %s23_s28 }
   0x9   :  { %p2421_p3 = scmp.ne.s32.totalorder %s23_s28, %s2420_s14  ;;  %p2426_p5 = scmp.lt.s32.totalorder %s2420_s14, %s2420_s14 }
   0xb   :  { %p2427_p6 = por %p2426_p5, %p2425_p4 }
   0xd   :  { %p2428_p7 = pnand %p2427_p6, %p2421_p3 }
   0xf   :  { %2431 = shalt.err (!%p2428_p7)
}
  0x10   :  { %s2459_s15 = smov 512   ;;  %s2460_s16 = smov 32  }
  0x11   :  { %28 = dma.hbm_to_vmem [thread:$0]  %s2822_s1, 1024, %s23_s28, [#allocation4], %s2459_s15, %s2459_s15, %s2460_s16  }
  0x12   :  { %2454 = dma.done.wait [#allocation4], 1024  }
  0x13   :  { %2455 = vsyncadd [#allocation4], 4294966272  ;;  %v2461_v0 = vmov 0.0   ;;  %v53_v1 = vld [vmem:[#allocation3 + $0x8] sm:$0xff]  ;;  %v55_v3 = vld [vmem:[#allocation3 + $0x18] sm:$0xff]  ;;  %vm82_vm0 = vcmask 130048   ;;  %v62_v45 = vlaneseq }
  0x14   :  { %171 = vmatprep.mubr.f32.mxu0 %v2461_v0  ;;  %284 = vmatprep.mubr.f32.mxu1 %v2461_v0  ;;  %v57_v2 = vld [vmem:[#allocation3 + $0x28] sm:$0xff]  ;;  %v59_v5 = vld [vmem:[#allocation3 + $0x38] sm:$0xff]  ;;  %v52_v6 = vld [vmem:[#allocation3] sm:$0xff]  ;;  %vm385_vm1 = vcmask 261120   ;;  %vm2463_vm2 = vmmov 0   ;;  %s2464_s11 = smov [#allocation6]  }
  0x15   :  { %v2066_v4 = vpack.c.bf16 %v57_v2, %v53_v1  ;;  %v56_v7 = vld [vmem:[#allocation3 + $0x20] sm:$0xff]  ;;  %v2070_v8 = vpack.c.bf16 %v59_v5, %v55_v3  ;;  %v54_v10 = vld [vmem:[#allocation3 + $0x10] sm:$0xff]  ;;  %v366_v13 = vld [vmem:[%s2823_s2 + $0x8] sm:$0xff]  ;;  %v63_v46 = vshrl.u32 %v62_v45, 7  ;;  %s1973_s12 = sshll.u32 %s2464_s11, 4  ;;  %vm1965_vm3 = vcmask 64512   ;;  %s1974_s12 = int_to_ptr.vmem [resolvable:$true] %s1973_s12 }
  0x16   :  { %v2068_v9 = vpack.c.bf16 %v56_v7, %v52_v6  ;;  %v58_v11 = vld [vmem:[#allocation3 + $0x30] sm:$0xff]  ;;  %v370_v14 = vld [vmem:[%s2823_s2 + $0x28] sm:$0xff]  ;;  %v365_v15 = vld [vmem:[%s2823_s2] sm:$0xff]  ;;  %p2437_p9 = scmp.lt.s32.totalorder %s1974_s12, %s1974_s12 }
  0x17   :  { %2067 = vmatprep.subr.bf16.mxu0 %v2066_v4  ;;  %v2072_v12 = vpack.c.bf16 %v58_v11, %v54_v10  ;;  %2071 = vmatprep.subr.bf16.mxu1 %v2070_v8  ;;  %v44_v16 = vld [vmem:[%s2821_s0] sm:$0xff]  ;;  %v2536_v17 = vpack.c.bf16 %v370_v14, %v366_v13  ;;  %v368_v20 = vld [vmem:[%s2823_s2 + $0x18] sm:$0xff]  ;;  %v374_v23 = vld [vmem:[%s2823_s2 + $0x48] sm:$0xff]  ;;  %v64_v47 = vsub.s32 0, %v63_v46  ;;  %v68_v49 = vsub.s32 1, %v63_v46 }
  0x18   :  { %2069 = vmatpush1.bf16.msra.mxu0 %v2068_v9  ;;  %v369_v18 = vld [vmem:[%s2823_s2 + $0x20] sm:$0xff]  ;;  %v372_v21 = vld [vmem:[%s2823_s2 + $0x38] sm:$0xff]  ;;  %v378_v24 = vld [vmem:[%s2823_s2 + $0x68] sm:$0xff]  ;;  %v76_v53 = vsub.s32 3, %v63_v46  ;;  %v72_v62 = vsub.s32 2, %v63_v46 }
  0x19   :  { %2073 = vmatpush1.bf16.msra.mxu1 %v2072_v12  ;;  %v2541_v19 = vpack.c.bf16 %v369_v18, %v365_v15  ;;  %2075 = vmatprep.subr.bf16.mxu0 %v2536_v17  ;;  %v2550_v22 = vpack.c.bf16 %v372_v21, %v368_v20  ;;  %v2559_v25 = vpack.c.bf16 %v378_v24, %v374_v23  ;;  %v367_v26 = vld [vmem:[%s2823_s2 + $0x10] sm:$0xff]  ;;  %v373_v28 = vld [vmem:[%s2823_s2 + $0x40] sm:$0xff]  ;;  %v45_v29 = vld [vmem:[%s2821_s0 + $0x8] sm:$0xff] }
  0x1a   :  { %v371_v27 = vld [vmem:[%s2823_s2 + $0x30] sm:$0xff]  ;;  %v377_v31 = vld [vmem:[%s2823_s2 + $0x60] sm:$0xff]  ;;  %v376_v33 = vld [vmem:[%s2823_s2 + $0x58] sm:$0xff] }
  0x1b   :  { %1982 = vmatmul.mubr.msk.f32.vlgmr.msra.gmra.mrb[0].mxu0 %vm82_vm0, %v44_v16  ;;  %v2575_v30 = vpack.c.bf16 %v371_v27, %v367_v26  ;;  %v2582_v32 = vpack.c.bf16 %v377_v31, %v373_v28  ;;  %v380_v34 = vld [vmem:[%s2823_s2 + $0x78] sm:$0xff]  ;;  %2083 = vmatprep.subr.bf16.mxu1 %v2550_v22  ;;  %v375_v36 = vld [vmem:[%s2823_s2 + $0x50] sm:$0xff]  ;;  %v48_v41 = vld [vmem:[%s2821_s0 + $0x20] sm:$0xff] }
  0x1c   :  { %1990 = vmatmul.mubr.msk.f32.vlgmr.msra.gmra.mrb[0].mxu1 %vm82_vm0, %v44_v16  ;;  %2077 = vmatpush1.bf16.msra.mxu0 %v2541_v19  ;;  %v2592_v35 = vpack.c.bf16 %v380_v34, %v376_v33  ;;  %v379_v37 = vld [vmem:[%s2823_s2 + $0x70] sm:$0xff]  ;;  %v47_v40 = vld [vmem:[%s2821_s0 + $0x18] sm:$0xff]  ;;  %v49_v42 = vld [vmem:[%s2821_s0 + $0x28] sm:$0xff] }
  0x1d   :  { %177 = vmatprep.mubr.f32.mxu0 %v2461_v0  ;;  %290 = vmatprep.mubr.f32.mxu1 %v2461_v0  ;;  %v2602_v38 = vpack.c.bf16 %v379_v37, %v375_v36  ;;  %v46_v39 = vld [vmem:[%s2821_s0 + $0x10] sm:$0xff]  ;;  %v51_v44 = vld [vmem:[%s2821_s0 + $0x38] sm:$0xff]  ;;  %v60_v48 = vld [vmem:[%s2824_s3] sm:$0xf] }
  0x1e   :  { %2079 = vmatprep.subr.bf16.mxu0 %v2559_v25  ;;  %2085 = vmatpush1.bf16.msra.mxu1 %v2575_v30  ;;  %v50_v43 = vld [vmem:[%s2821_s0 + $0x30] sm:$0xff]  ;;  %v2669_v50 = vrot.slane %v60_v48, %v64_v47  ;;  %v2671_v51 = vrot.slane %v60_v48, %v68_v49  ;;  %v2675_v61 = vrot.slane %v60_v48, %v76_v53 }
  0x1f   :  { %1983 = vmatmul.mubr.msk.f32.gmra.mrb[2].mxu0 %vm82_vm0, %v45_v29  ;;  %2087 = vmatprep.subr.bf16.mxu1 %v2592_v35  ;;  %v2678_v1 = vrot.slane %v60_v48, %v72_v62 }
  0x20   :  { %1991 = vmatmul.mubr.msk.f32.gmra.mrb[2].mxu1 %vm82_vm0, %v45_v29  ;;  %183 = vmatprep.mubr.f32.mxu0 %v2461_v0 }
  0x21   :  { %296 = vmatprep.mubr.f32.mxu1 %v2461_v0  ;;  %2081 = vmatpush1.bf16.msra.mxu0 %v2582_v32 }
  0x22   :  { %2091 = vmatprep.subr.bf16.mxu0 %v2536_v17  ;;  %2089 = vmatpush1.bf16.msra.mxu1 %v2602_v38 }
  0x23   :  { %1984 = vmatmul.mubr.msk.f32.gmra.mrb[4].mxu0 %vm82_vm0, %v46_v39  ;;  %2099 = vmatprep.subr.bf16.mxu1 %v2550_v22 }
  0x24   :  { %1992 = vmatmul.mubr.msk.f32.gmra.mrb[4].mxu1 %vm82_vm0, %v46_v39  ;;  %189 = vmatprep.mubr.f32.mxu0 %v2461_v0 }
  0x25   :  { %302 = vmatprep.mubr.f32.mxu1 %v2461_v0 }
  0x27   :  { %1985 = vmatmul.mubr.msk.f32.gmra.mrb[6].mxu0 %vm82_vm0, %v47_v40 }
  0x28   :  { %1993 = vmatmul.mubr.msk.f32.gmra.mrb[6].mxu1 %vm82_vm0, %v47_v40  ;;  %195 = vmatprep.mubr.f32.mxu0 %v2461_v0 }
  0x29   :  { %308 = vmatprep.mubr.f32.mxu1 %v2461_v0 }
  0x2b   :  { %1986 = vmatmul.mubr.msk.f32.gmra.mrb[8].mxu0 %vm82_vm0, %v48_v41 }
  0x2c   :  { %1994 = vmatmul.mubr.msk.f32.gmra.mrb[8].mxu1 %vm82_vm0, %v48_v41  ;;  %201 = vmatprep.mubr.f32.mxu0 %v2461_v0 }
  0x2d   :  { %314 = vmatprep.mubr.f32.mxu1 %v2461_v0 }
  0x2f   :  { %1987 = vmatmul.mubr.msk.f32.gmra.mrb[10].mxu0 %vm82_vm0, %v49_v42 }
  0x30   :  { %1995 = vmatmul.mubr.msk.f32.gmra.mrb[10].mxu1 %vm82_vm0, %v49_v42  ;;  %207 = vmatprep.mubr.f32.mxu0 %v2461_v0 }
  0x31   :  { %320 = vmatprep.mubr.f32.mxu1 %v2461_v0 }
  0x33   :  { %1988 = vmatmul.mubr.msk.f32.gmra.mrb[12].mxu0 %vm82_vm0, %v50_v43 }
  0x34   :  { %1996 = vmatmul.mubr.msk.f32.gmra.mrb[12].mxu1 %vm82_vm0, %v50_v43  ;;  %213 = vmatprep.mubr.f32.mxu0 %v2461_v0 }
  0x35   :  { %326 = vmatprep.mubr.f32.mxu1 %v2461_v0 }
  0x37   :  { %1989 = vmatmul.mubr.msk.f32.gmra.mrb[14].mxu0 %vm82_vm0, %v51_v44 }
  0x38   :  { %1997 = vmatmul.mubr.msk.f32.gmra.mrb[14].mxu1 %vm82_vm0, %v51_v44  ;;  %453 = vmatprep.mubr.f32.mxu0 %v2461_v0 }
  0x39   :  { %524 = vmatprep.mubr.f32.mxu1 %v2461_v0 }
  0x3b   :  { %454 = vmatmul.mubr.f32.vlgmr.msra.gmra.mrb[0].mxu0 %v2461_v0 }
  0x3c   :  { %525 = vmatmul.mubr.f32.vlgmr.msra.gmra.mrb[0].mxu1 %v2461_v0  ;;  %2093 = vmatpush1.bf16.msra.mxu0 %v2541_v19 }
  0x3d   :  { %2101 = vmatpush1.bf16.msra.mxu1 %v2575_v30  ;;  %2095 = vmatprep.subr.bf16.mxu0 %v2559_v25 }
  0x3e   :  { %2103 = vmatprep.subr.bf16.mxu1 %v2592_v35  ;;  %630 = vmatprep.mubr.f32.mxu0 %v2461_v0 }
  0x3f   :  { %701 = vmatprep.mubr.f32.mxu1 %v2461_v0 }
  0x40   :  { %2097 = vmatpush1.bf16.msra.mxu0 %v2582_v32 }
  0x41   :  { %2105 = vmatpush1.bf16.msra.mxu1 %v2602_v38  ;;  %2107 = vmatprep.subr.bf16.mxu0 %v2536_v17 }
  0x42   :  { %2115 = vmatprep.subr.bf16.mxu1 %v2550_v22 }
 0x10e   :  { %v455_v52 = vpop.f32.mrb[0].mxu0 }
 0x10f   :  { %v2211_v54 = vadd.f32 %v455_v52, %v2669_v50  ;;  %v526_v55 = vpop.f32.mrb[0].mxu1  ;;  %v457_v56 = vpop.f32.mrb[1].mxu0 }
 0x110   :  { %v2212_v57 = vadd.f32 %v457_v56, %v2671_v51  ;;  %v528_v58 = vpop.f32.mrb[1].mxu1  ;;  %v2227_v3 = vadd.f32 %v526_v55, %v2678_v1 }
 0x111   :  { %v1998_v59 = vmul.f32 -1.442695, %v2211_v54  ;;  %v2228_v63 = vadd.f32 %v528_v58, %v2675_v61 }
 0x112   :  { %v1999_v60 = vmul.f32 -1.442695, %v2212_v57 }
 0x113   :  { %2282 = vpow2.f32 %v1998_v59  ;;  %v2000_v2 = vmul.f32 -1.442695, %v2228_v63 }
 0x114   :  { %2284 = vpow2.f32 %v1999_v60 }
 0x115   :  { %2286 = vpow2.f32 %v2000_v2 }
 0x116   :  { %2288 = vtanh.f32 %v2227_v3 }
 0x11d   :  { %v2283_v4 = vpop.eup %2282 }
 0x11e   :  { %v2285_v5 = vpop.eup %2284  ;;  %v538_v6 = vadd.f32 1.0, %v2283_v4 }
 0x11f   :  { %v544_v7 = vadd.f32 1.0, %v2285_v5  ;;  %v2287_v8 = vpop.eup %2286 }
 0x120   :  { %2290 = vrcp.f32 %v538_v6  ;;  %v2289_v9 = vpop.eup %2288  ;;  %v551_v13 = vadd.f32 1.0, %v2287_v8 }
 0x121   :  { %2292 = vrcp.f32 %v544_v7 }
 0x122   :  { %2294 = vrcp.f32 %v551_v13 }
 0x12a   :  { %v2291_v10 = vpop.eup %2290 }
 0x12b   :  { %v2293_v11 = vpop.eup %2292  ;;  %v555_v12 = vmul.f32 %v2291_v10, %v2289_v9 }
 0x12c   :  { %v554_v14 = vmul.f32 0.0, %v2293_v11  ;;  %v2295_v16 = vpop.eup %2294 }
 0x12e   :  { %v556_v15 = vadd.f32 %v555_v12, %v554_v14 }
 0x130   :  { %2296 = vtanh.f32 %v556_v15 }
 0x13a   :  { %v2297_v18 = vpop.eup %2296 }
 0x13b   :  { %v558_v20 = vmul.f32 %v2297_v18, %v2295_v16 }
 0x13d   :  { %2001 = vmatmul.mubr.msk.f32.vlgmr.msra.gmra.mrb[2].mxu0 %vm385_vm1, %v558_v20  ;;  %2002 = vmatmul.mubr.msk.f32.vlgmr.msra.gmra.mrb[2].mxu1 %vm385_vm1, %v558_v20 }
 0x13e   :  { %2109 = vmatpush1.bf16.msra.mxu0 %v2541_v19  ;;  %2117 = vmatpush1.bf16.msra.mxu1 %v2575_v30 }
 0x13f   :  { %2111 = vmatprep.subr.bf16.mxu0 %v2559_v25  ;;  %2119 = vmatprep.subr.bf16.mxu1 %v2592_v35 }
 0x140   :  { %807 = vmatprep.mubr.f32.mxu0 %v2461_v0  ;;  %878 = vmatprep.mubr.f32.mxu1 %v2461_v0 }
 0x142   :  { %2113 = vmatpush1.bf16.msra.mxu0 %v2582_v32  ;;  %2121 = vmatpush1.bf16.msra.mxu1 %v2602_v38 }
 0x143   :  { %2123 = vmatprep.subr.bf16.mxu0 %v2536_v17  ;;  %2131 = vmatprep.subr.bf16.mxu1 %v2550_v22 }
 0x210   :  { %v632_v21 = vpop.f32.mrb[2].mxu0  ;;  %v703_v23 = vpop.f32.mrb[2].mxu1 }
 0x211   :  { %v2213_v24 = vadd.f32 %v632_v21, %v2669_v50  ;;  %v634_v26 = vpop.f32.mrb[3].mxu0  ;;  %v705_v27 = vpop.f32.mrb[3].mxu1  ;;  %v2229_v36 = vadd.f32 %v703_v23, %v2678_v1 }
 0x212   :  { %v2214_v28 = vadd.f32 %v634_v26, %v2671_v51  ;;  %v2230_v33 = vadd.f32 %v705_v27, %v2675_v61 }
 0x213   :  { %v2003_v29 = vmul.f32 -1.442695, %v2213_v24 }
 0x214   :  { %v2004_v31 = vmul.f32 -1.442695, %v2214_v28  ;;  %v2005_v34 = vmul.f32 -1.442695, %v2230_v33 }
 0x215   :  { %2298 = vpow2.f32 %v2003_v29 }
 0x216   :  { %2300 = vpow2.f32 %v2004_v31 }
 0x217   :  { %2302 = vpow2.f32 %v2005_v34 }
 0x218   :  { %2304 = vtanh.f32 %v2229_v36 }
 0x21f   :  { %v2299_v37 = vpop.eup %2298 }
 0x220   :  { %v2301_v39 = vpop.eup %2300  ;;  %v715_v40 = vadd.f32 1.0, %v2299_v37 }
 0x221   :  { %v721_v41 = vadd.f32 1.0, %v2301_v39  ;;  %v2303_v42 = vpop.eup %2302 }
 0x222   :  { %2306 = vrcp.f32 %v715_v40  ;;  %v2305_v43 = vpop.eup %2304  ;;  %v728_v47 = vadd.f32 1.0, %v2303_v42 }
 0x223   :  { %2308 = vrcp.f32 %v721_v41 }
 0x224   :  { %2310 = vrcp.f32 %v728_v47 }
 0x22c   :  { %v2307_v44 = vpop.eup %2306 }
 0x22d   :  { %v2309_v45 = vpop.eup %2308  ;;  %v732_v46 = vmul.f32 %v2307_v44, %v2305_v43 }
 0x22e   :  { %v731_v48 = vmul.f32 %v2309_v45, %v556_v15  ;;  %v2311_v52 = vpop.eup %2310 }
 0x230   :  { %v733_v49 = vadd.f32 %v732_v46, %v731_v48 }
 0x232   :  { %2312 = vtanh.f32 %v733_v49 }
 0x23c   :  { %v2313_v53 = vpop.eup %2312 }
 0x23d   :  { %v735_v54 = vmul.f32 %v2313_v53, %v2311_v52 }
 0x23f   :  { %2006 = vmatmul.mubr.msk.f32.vlgmr.msra.gmra.mrb[4].mxu0 %vm385_vm1, %v735_v54  ;;  %2007 = vmatmul.mubr.msk.f32.vlgmr.msra.gmra.mrb[4].mxu1 %vm385_vm1, %v735_v54 }
 0x240   :  { %2125 = vmatpush1.bf16.msra.mxu0 %v2541_v19  ;;  %2133 = vmatpush1.bf16.msra.mxu1 %v2575_v30 }
 0x241   :  { %2127 = vmatprep.subr.bf16.mxu0 %v2559_v25  ;;  %2135 = vmatprep.subr.bf16.mxu1 %v2592_v35 }
 0x242   :  { %984 = vmatprep.mubr.f32.mxu0 %v2461_v0  ;;  %1055 = vmatprep.mubr.f32.mxu1 %v2461_v0 }
 0x244   :  { %2129 = vmatpush1.bf16.msra.mxu0 %v2582_v32  ;;  %2137 = vmatpush1.bf16.msra.mxu1 %v2602_v38 }
 0x245   :  { %2139 = vmatprep.subr.bf16.mxu0 %v2536_v17  ;;  %2147 = vmatprep.subr.bf16.mxu1 %v2550_v22 }
 0x312   :  { %v809_v55 = vpop.f32.mrb[4].mxu0  ;;  %v880_v56 = vpop.f32.mrb[4].mxu1 }
 0x313   :  { %v2215_v57 = vadd.f32 %v809_v55, %v2669_v50  ;;  %v811_v58 = vpop.f32.mrb[5].mxu0  ;;  %v882_v59 = vpop.f32.mrb[5].mxu1  ;;  %v2231_v4 = vadd.f32 %v880_v56, %v2678_v1 }
 0x314   :  { %v2216_v60 = vadd.f32 %v811_v58, %v2671_v51  ;;  %v2232_v2 = vadd.f32 %v882_v59, %v2675_v61 }
 0x315   :  { %v2008_v62 = vmul.f32 -1.442695, %v2215_v57 }
 0x316   :  { %v2009_v63 = vmul.f32 -1.442695, %v2216_v60  ;;  %v2010_v3 = vmul.f32 -1.442695, %v2232_v2 }
 0x317   :  { %2314 = vpow2.f32 %v2008_v62 }
 0x318   :  { %2316 = vpow2.f32 %v2009_v63 }
 0x319   :  { %2318 = vpow2.f32 %v2010_v3 }
 0x31a   :  { %2320 = vtanh.f32 %v2231_v4 }
 0x321   :  { %v2315_v5 = vpop.eup %2314 }
 0x322   :  { %v2317_v6 = vpop.eup %2316  ;;  %v892_v7 = vadd.f32 1.0, %v2315_v5 }
 0x323   :  { %v898_v8 = vadd.f32 1.0, %v2317_v6  ;;  %v2319_v9 = vpop.eup %2318 }
 0x324   :  { %2322 = vrcp.f32 %v892_v7  ;;  %v2321_v10 = vpop.eup %2320  ;;  %v905_v14 = vadd.f32 1.0, %v2319_v9 }
 0x325   :  { %2324 = vrcp.f32 %v898_v8 }
 0x326   :  { %2326 = vrcp.f32 %v905_v14 }
 0x32e   :  { %v2323_v11 = vpop.eup %2322 }
 0x32f   :  { %v2325_v12 = vpop.eup %2324  ;;  %v909_v13 = vmul.f32 %v2323_v11, %v2321_v10 }
 0x330   :  { %v908_v15 = vmul.f32 %v2325_v12, %v733_v49  ;;  %v2327_v18 = vpop.eup %2326 }
 0x332   :  { %v910_v16 = vadd.f32 %v909_v13, %v908_v15 }
 0x334   :  { %2328 = vtanh.f32 %v910_v16 }
 0x33e   :  { %v2329_v20 = vpop.eup %2328 }
 0x33f   :  { %v912_v21 = vmul.f32 %v2329_v20, %v2327_v18 }
 0x341   :  { %2011 = vmatmul.mubr.msk.f32.vlgmr.msra.gmra.mrb[6].mxu0 %vm385_vm1, %v912_v21  ;;  %2012 = vmatmul.mubr.msk.f32.vlgmr.msra.gmra.mrb[6].mxu1 %vm385_vm1, %v912_v21 }
 0x342   :  { %2141 = vmatpush1.bf16.msra.mxu0 %v2541_v19  ;;  %2149 = vmatpush1.bf16.msra.mxu1 %v2575_v30 }
 0x343   :  { %2143 = vmatprep.subr.bf16.mxu0 %v2559_v25  ;;  %2151 = vmatprep.subr.bf16.mxu1 %v2592_v35 }
 0x344   :  { %1161 = vmatprep.mubr.f32.mxu0 %v2461_v0  ;;  %1232 = vmatprep.mubr.f32.mxu1 %v2461_v0 }
 0x346   :  { %2145 = vmatpush1.bf16.msra.mxu0 %v2582_v32  ;;  %2153 = vmatpush1.bf16.msra.mxu1 %v2602_v38 }
 0x347   :  { %2155 = vmatprep.subr.bf16.mxu0 %v2536_v17  ;;  %2163 = vmatprep.subr.bf16.mxu1 %v2550_v22 }
 0x414   :  { %v986_v23 = vpop.f32.mrb[6].mxu0  ;;  %v1057_v24 = vpop.f32.mrb[6].mxu1 }
 0x415   :  { %v2217_v26 = vadd.f32 %v986_v23, %v2669_v50  ;;  %v988_v27 = vpop.f32.mrb[7].mxu0  ;;  %v1059_v28 = vpop.f32.mrb[7].mxu1  ;;  %v2233_v37 = vadd.f32 %v1057_v24, %v2678_v1 }
 0x416   :  { %v2218_v29 = vadd.f32 %v988_v27, %v2671_v51  ;;  %v2234_v34 = vadd.f32 %v1059_v28, %v2675_v61 }
 0x417   :  { %v2013_v31 = vmul.f32 -1.442695, %v2217_v26 }
 0x418   :  { %v2014_v33 = vmul.f32 -1.442695, %v2218_v29  ;;  %v2015_v36 = vmul.f32 -1.442695, %v2234_v34 }
 0x419   :  { %2330 = vpow2.f32 %v2013_v31 }
 0x41a   :  { %2332 = vpow2.f32 %v2014_v33 }
 0x41b   :  { %2334 = vpow2.f32 %v2015_v36 }
 0x41c   :  { %2336 = vtanh.f32 %v2233_v37 }
 0x423   :  { %v2331_v39 = vpop.eup %2330 }
 0x424   :  { %v2333_v40 = vpop.eup %2332  ;;  %v1069_v41 = vadd.f32 1.0, %v2331_v39 }
 0x425   :  { %v1075_v42 = vadd.f32 1.0, %v2333_v40  ;;  %v2335_v43 = vpop.eup %2334 }
 0x426   :  { %2338 = vrcp.f32 %v1069_v41  ;;  %v2337_v44 = vpop.eup %2336  ;;  %v1082_v48 = vadd.f32 1.0, %v2335_v43 }
 0x427   :  { %2340 = vrcp.f32 %v1075_v42 }
 0x428   :  { %2342 = vrcp.f32 %v1082_v48 }
 0x430   :  { %v2339_v45 = vpop.eup %2338 }
 0x431   :  { %v2341_v46 = vpop.eup %2340  ;;  %v1086_v47 = vmul.f32 %v2339_v45, %v2337_v44 }
 0x432   :  { %v1085_v49 = vmul.f32 %v2341_v46, %v910_v16  ;;  %v2343_v53 = vpop.eup %2342 }
 0x434   :  { %v1087_v52 = vadd.f32 %v1086_v47, %v1085_v49 }
 0x436   :  { %2344 = vtanh.f32 %v1087_v52 }
 0x440   :  { %v2345_v54 = vpop.eup %2344 }
 0x441   :  { %v1089_v55 = vmul.f32 %v2345_v54, %v2343_v53 }
 0x443   :  { %2016 = vmatmul.mubr.msk.f32.vlgmr.msra.gmra.mrb[8].mxu0 %vm385_vm1, %v1089_v55  ;;  %2017 = vmatmul.mubr.msk.f32.vlgmr.msra.gmra.mrb[8].mxu1 %vm385_vm1, %v1089_v55 }
 0x444   :  { %2157 = vmatpush1.bf16.msra.mxu0 %v2541_v19  ;;  %2165 = vmatpush1.bf16.msra.mxu1 %v2575_v30 }
 0x445   :  { %2159 = vmatprep.subr.bf16.mxu0 %v2559_v25  ;;  %2167 = vmatprep.subr.bf16.mxu1 %v2592_v35 }
 0x446   :  { %1338 = vmatprep.mubr.f32.mxu0 %v2461_v0  ;;  %1409 = vmatprep.mubr.f32.mxu1 %v2461_v0 }
 0x448   :  { %2161 = vmatpush1.bf16.msra.mxu0 %v2582_v32  ;;  %2169 = vmatpush1.bf16.msra.mxu1 %v2602_v38 }
 0x449   :  { %2171 = vmatprep.subr.bf16.mxu0 %v2536_v17  ;;  %2179 = vmatprep.subr.bf16.mxu1 %v2550_v22 }
 0x516   :  { %v1163_v56 = vpop.f32.mrb[8].mxu0  ;;  %v1234_v57 = vpop.f32.mrb[8].mxu1 }
 0x517   :  { %v2219_v58 = vadd.f32 %v1163_v56, %v2669_v50  ;;  %v1165_v59 = vpop.f32.mrb[9].mxu0  ;;  %v1236_v60 = vpop.f32.mrb[9].mxu1  ;;  %v2235_v5 = vadd.f32 %v1234_v57, %v2678_v1 }
 0x518   :  { %v2220_v62 = vadd.f32 %v1165_v59, %v2671_v51  ;;  %v2236_v3 = vadd.f32 %v1236_v60, %v2675_v61 }
 0x519   :  { %v2018_v63 = vmul.f32 -1.442695, %v2219_v58 }
 0x51a   :  { %v2019_v2 = vmul.f32 -1.442695, %v2220_v62  ;;  %v2020_v4 = vmul.f32 -1.442695, %v2236_v3 }
 0x51b   :  { %2346 = vpow2.f32 %v2018_v63 }
 0x51c   :  { %2348 = vpow2.f32 %v2019_v2 }
 0x51d   :  { %2350 = vpow2.f32 %v2020_v4 }
 0x51e   :  { %2352 = vtanh.f32 %v2235_v5 }
 0x525   :  { %v2347_v6 = vpop.eup %2346 }
 0x526   :  { %v2349_v7 = vpop.eup %2348  ;;  %v1246_v8 = vadd.f32 1.0, %v2347_v6 }
 0x527   :  { %v1252_v9 = vadd.f32 1.0, %v2349_v7  ;;  %v2351_v10 = vpop.eup %2350 }
 0x528   :  { %2354 = vrcp.f32 %v1246_v8  ;;  %v2353_v11 = vpop.eup %2352  ;;  %v1259_v15 = vadd.f32 1.0, %v2351_v10 }
 0x529   :  { %2356 = vrcp.f32 %v1252_v9 }
 0x52a   :  { %2358 = vrcp.f32 %v1259_v15  ;;  %v1799_v15 = vld [vmem:[%s2825_s4 + $0x8] sm:$0xff] }
 0x532   :  { %v2355_v12 = vpop.eup %2354 }
 0x533   :  { %v2357_v13 = vpop.eup %2356  ;;  %v1263_v14 = vmul.f32 %v2355_v12, %v2353_v11 }
 0x534   :  { %v1262_v16 = vmul.f32 %v2357_v13, %v1087_v52  ;;  %v2359_v20 = vpop.eup %2358 }
 0x536   :  { %v1264_v18 = vadd.f32 %v1263_v14, %v1262_v16  ;;  %v1798_v14 = vld [vmem:[%s2825_s4] sm:$0xff]  ;;  %v1800_v16 = vld [vmem:[%s2825_s4 + $0x10] sm:$0xff] }
 0x538   :  { %2360 = vtanh.f32 %v1264_v18 }
 0x542   :  { %v2361_v21 = vpop.eup %2360 }
 0x543   :  { %v1266_v23 = vmul.f32 %v2361_v21, %v2359_v20  ;;  %v2203_v20 = vpack.c.bf16 %v1799_v15, %v1798_v14  ;;  %v1801_v21 = vld [vmem:[%s2825_s4 + $0x18] sm:$0xff] }
 0x545   :  { %2021 = vmatmul.mubr.msk.f32.vlgmr.msra.gmra.mrb[10].mxu0 %vm385_vm1, %v1266_v23  ;;  %2022 = vmatmul.mubr.msk.f32.vlgmr.msra.gmra.mrb[10].mxu1 %vm385_vm1, %v1266_v23  ;;  %v2206_v23 = vpack.c.bf16 %v1801_v21, %v1800_v16 }
 0x546   :  { %2173 = vmatpush1.bf16.msra.mxu0 %v2541_v19  ;;  %2181 = vmatpush1.bf16.msra.mxu1 %v2575_v30 }
 0x547   :  { %2175 = vmatprep.subr.bf16.mxu0 %v2559_v25  ;;  %2183 = vmatprep.subr.bf16.mxu1 %v2592_v35 }
 0x548   :  { %1515 = vmatprep.mubr.f32.mxu0 %v2461_v0  ;;  %1586 = vmatprep.mubr.f32.mxu1 %v2461_v0 }
 0x54a   :  { %2177 = vmatpush1.bf16.msra.mxu0 %v2582_v32  ;;  %2185 = vmatpush1.bf16.msra.mxu1 %v2602_v38 }
 0x54b   :  { %2187 = vmatprep.subr.bf16.mxu0 %v2536_v17  ;;  %2195 = vmatprep.subr.bf16.mxu1 %v2550_v22 }
 0x618   :  { %v1340_v24 = vpop.f32.mrb[10].mxu0  ;;  %v1411_v26 = vpop.f32.mrb[10].mxu1 }
 0x619   :  { %v2221_v27 = vadd.f32 %v1340_v24, %v2669_v50  ;;  %v1342_v28 = vpop.f32.mrb[11].mxu0  ;;  %v1413_v29 = vpop.f32.mrb[11].mxu1  ;;  %v2237_v39 = vadd.f32 %v1411_v26, %v2678_v1 }
 0x61a   :  { %v2222_v31 = vadd.f32 %v1342_v28, %v2671_v51  ;;  %v2238_v36 = vadd.f32 %v1413_v29, %v2675_v61 }
 0x61b   :  { %v2023_v33 = vmul.f32 -1.442695, %v2221_v27 }
 0x61c   :  { %v2024_v34 = vmul.f32 -1.442695, %v2222_v31  ;;  %v2025_v37 = vmul.f32 -1.442695, %v2238_v36 }
 0x61d   :  { %2362 = vpow2.f32 %v2023_v33 }
 0x61e   :  { %2364 = vpow2.f32 %v2024_v34 }
 0x61f   :  { %2366 = vpow2.f32 %v2025_v37 }
 0x620   :  { %2368 = vtanh.f32 %v2237_v39 }
 0x627   :  { %v2363_v17 = vpop.eup %2362 }
 0x628   :  { %v2365_v40 = vpop.eup %2364  ;;  %v1423_v22 = vadd.f32 1.0, %v2363_v17 }
 0x629   :  { %v1429_v41 = vadd.f32 1.0, %v2365_v40  ;;  %v2367_v42 = vpop.eup %2366 }
 0x62a   :  { %2370 = vrcp.f32 %v1423_v22  ;;  %v2369_v43 = vpop.eup %2368  ;;  %v1436_v47 = vadd.f32 1.0, %v2367_v42 }
 0x62b   :  { %2372 = vrcp.f32 %v1429_v41 }
 0x62c   :  { %2374 = vrcp.f32 %v1436_v47 }
 0x634   :  { %v2371_v44 = vpop.eup %2370 }
 0x635   :  { %v2373_v45 = vpop.eup %2372  ;;  %v1440_v46 = vmul.f32 %v2371_v44, %v2369_v43 }
 0x636   :  { %v1439_v48 = vmul.f32 %v2373_v45, %v1264_v18  ;;  %v2375_v52 = vpop.eup %2374  ;;  %v2462_v18 = vmov 0.0|0.0  }
 0x638   :  { %v1441_v49 = vadd.f32 %v1440_v46, %v1439_v48  ;;  %v1883_v48 = vld [vmem:[%s2827_s6] sm:$0xff] }
 0x63a   :  { %2376 = vtanh.f32 %v1441_v49 }
 0x644   :  { %v2377_v53 = vpop.eup %2376 }
 0x645   :  { %v1443_v54 = vmul.f32 %v2377_v53, %v2375_v52  ;;  %v2036_v53 = vld [vmem:[%s2826_s5] ss:$0 sm:$0xff] }
 0x647   :  { %2026 = vmatmul.mubr.msk.f32.vlgmr.msra.gmra.mrb[12].mxu0 %vm385_vm1, %v1443_v54  ;;  %2027 = vmatmul.mubr.msk.f32.vlgmr.msra.gmra.mrb[12].mxu1 %vm385_vm1, %v1443_v54 }
 0x648   :  { %2189 = vmatpush1.bf16.msra.mxu0 %v2541_v19  ;;  %2197 = vmatpush1.bf16.msra.mxu1 %v2575_v30 }
 0x649   :  { %2191 = vmatprep.subr.bf16.mxu0 %v2559_v25  ;;  %2199 = vmatprep.subr.bf16.mxu1 %v2592_v35 }
 0x64a   :  { %1692 = vmatprep.mubr.f32.mxu0 %v2461_v0  ;;  %1763 = vmatprep.mubr.f32.mxu1 %v2461_v0 }
 0x64c   :  { %2193 = vmatpush1.bf16.msra.mxu0 %v2582_v32  ;;  %2201 = vmatpush1.bf16.msra.mxu1 %v2602_v38 }
 0x64d   :  { %2202 = vmatprep.subr.bf16.mxu0 %v2462_v18  ;;  %2208 = vmatprep.subr.bf16.mxu1 %v2462_v18 }
 0x71a   :  { %v1517_v55 = vpop.f32.mrb[12].mxu0  ;;  %v1588_v56 = vpop.f32.mrb[12].mxu1 }
 0x71b   :  { %v2223_v57 = vadd.f32 %v1517_v55, %v2669_v50  ;;  %v1519_v58 = vpop.f32.mrb[13].mxu0  ;;  %v1590_v19 = vpop.f32.mrb[13].mxu1  ;;  %v2239_v62 = vadd.f32 %v1588_v56, %v2678_v1 }
 0x71c   :  { %v2224_v30 = vadd.f32 %v1519_v58, %v2671_v51  ;;  %v2240_v35 = vadd.f32 %v1590_v19, %v2675_v61  ;;  %v2038_v58 = vld [vmem:[%s2828_s7] ss:$0 sm:$0xff] }
 0x71d   :  { %v2028_v59 = vmul.f32 -1.442695, %v2223_v57 }
 0x71e   :  { %v2029_v25 = vmul.f32 -1.442695, %v2224_v30  ;;  %v2030_v60 = vmul.f32 -1.442695, %v2240_v35 }
 0x71f   :  { %2378 = vpow2.f32 %v2028_v59 }
 0x720   :  { %2380 = vpow2.f32 %v2029_v25 }
 0x721   :  { %2382 = vpow2.f32 %v2030_v60 }
 0x722   :  { %2384 = vtanh.f32 %v2239_v62 }
 0x729   :  { %v2379_v32 = vpop.eup %2378 }
 0x72a   :  { %v2381_v63 = vpop.eup %2380  ;;  %v1600_v38 = vadd.f32 1.0, %v2379_v32 }
 0x72b   :  { %v1606_v2 = vadd.f32 1.0, %v2381_v63  ;;  %v2383_v3 = vpop.eup %2382 }
 0x72c   :  { %2386 = vrcp.f32 %v1600_v38  ;;  %v2385_v4 = vpop.eup %2384  ;;  %v1613_v8 = vadd.f32 1.0, %v2383_v3 }
 0x72d   :  { %2388 = vrcp.f32 %v1606_v2 }
 0x72e   :  { %2390 = vrcp.f32 %v1613_v8 }
 0x736   :  { %v2387_v5 = vpop.eup %2386 }
 0x737   :  { %v2389_v6 = vpop.eup %2388  ;;  %v1617_v7 = vmul.f32 %v2387_v5, %v2385_v4 }
 0x738   :  { %v1616_v9 = vmul.f32 %v2389_v6, %v1441_v49  ;;  %v2391_v11 = vpop.eup %2390  ;;  %v1884_v49 = vld [vmem:[%s2827_s6 + $0x8] sm:$0xff]  ;;  %s2432_s6 = scalar_lea.vmem %s1974_s12, 128 }
 0x739   :  { %v2209_v52 = vpack.c.bf16 %v1884_v49, %v1883_v48  ;;  %p2433_p8 = scmp.ne.s32.totalorder %s1974_s12, %s2432_s6  ;;  %p2438_p10 = scmp.lt.s32.totalorder %s2432_s6, %s2432_s6 }
 0x73a   :  { %v1618_v10 = vadd.f32 %v1617_v7, %v1616_v9 }
 0x73b   :  { %p2439_p11 = por %p2438_p10, %p2437_p9 }
 0x73c   :  { %2392 = vtanh.f32 %v1618_v10 }
 0x73d   :  { %p2440_p12 = pnand %p2439_p11, %p2433_p8 }
 0x746   :  { %v2393_v12 = vpop.eup %2392 }
 0x747   :  { %v1620_v13 = vmul.f32 %v2393_v12, %v2391_v11 }
 0x749   :  { %2031 = vmatmul.mubr.msk.f32.vlgmr.msra.gmra.mrb[14].mxu0 %vm385_vm1, %v1620_v13  ;;  %2032 = vmatmul.mubr.msk.f32.vlgmr.msra.gmra.mrb[14].mxu1 %vm385_vm1, %v1620_v13 }
 0x74a   :  { %2056 = vmatprep.mubr.msk.f32.mxu0 %vm2463_vm2, %v2461_v0  ;;  %2063 = vmatprep.mubr.msk.f32.mxu1 %vm2463_vm2, %v2461_v0 }
 0x74b   :  { %2204 = vmatpush3.bf16.msra.mxu0 %v2203_v20  ;;  %2210 = vmatpush3.bf16.msra.mxu1 %v2209_v52 }
 0x74c   :  { %2205 = vmatprep.subr.bf16.mxu0 %v2462_v18 }
 0x74f   :  { %2207 = vmatpush3.bf16.msra.mxu0 %v2206_v23 }
 0x81c   :  { %v1694_v24 = vpop.f32.mrb[14].mxu0  ;;  %v1765_v26 = vpop.f32.mrb[14].mxu1 }
 0x81d   :  { %v2225_v27 = vadd.f32 %v1694_v24, %v2669_v50  ;;  %v1696_v28 = vpop.f32.mrb[15].mxu0  ;;  %v1767_v29 = vpop.f32.mrb[15].mxu1  ;;  %v2241_v0 = vadd.f32 %v1765_v26, %v2678_v1 }
 0x81e   :  { %v2226_v31 = vadd.f32 %v1696_v28, %v2671_v51  ;;  %v2242_v36 = vadd.f32 %v1767_v29, %v2675_v61 }
 0x81f   :  { %v2033_v33 = vmul.f32 -1.442695, %v2225_v27 }
 0x820   :  { %v2034_v34 = vmul.f32 -1.442695, %v2226_v31  ;;  %v2035_v37 = vmul.f32 -1.442695, %v2242_v36 }
 0x821   :  { %2394 = vpow2.f32 %v2033_v33 }
 0x822   :  { %2396 = vpow2.f32 %v2034_v34 }
 0x823   :  { %2398 = vpow2.f32 %v2035_v37 }
 0x824   :  { %2400 = vtanh.f32 %v2241_v0 }
 0x82b   :  { %v2395_v39 = vpop.eup %2394 }
 0x82c   :  { %v2397_v17 = vpop.eup %2396  ;;  %v1777_v40 = vadd.f32 1.0, %v2395_v39 }
 0x82d   :  { %v1783_v22 = vadd.f32 1.0, %v2397_v17  ;;  %v2399_v50 = vpop.eup %2398 }
 0x82e   :  { %2402 = vrcp.f32 %v1777_v40  ;;  %v2401_v41 = vpop.eup %2400  ;;  %v1790_v44 = vadd.f32 1.0, %v2399_v50 }
 0x82f   :  { %2404 = vrcp.f32 %v1783_v22 }
 0x830   :  { %2406 = vrcp.f32 %v1790_v44 }
 0x838   :  { %v2403_v51 = vpop.eup %2402 }
 0x839   :  { %v2405_v42 = vpop.eup %2404  ;;  %v1794_v43 = vmul.f32 %v2403_v51, %v2401_v41 }
 0x83a   :  { %v1793_v45 = vmul.f32 %v2405_v42, %v1618_v10  ;;  %v2407_v61 = vpop.eup %2406 }
 0x83c   :  { %v1795_v46 = vadd.f32 %v1794_v43, %v1793_v45 }
 0x83e   :  { %2408 = vtanh.f32 %v1795_v46 }
 0x848   :  { %v2409_v1 = vpop.eup %2408 }
 0x849   :  { %v1797_v47 = vmul.f32 %v2409_v1, %v2407_v61 }
 0x84b   :  { %2057 = vmatmul.mubr.msk.f32.vlgmr.msra.gmra.mrb[16].mxu0 %vm385_vm1, %v1797_v47 }
 0x91e   :  { %v1878_v54 = vpop.f32.mrb[16].mxu0 }
 0x91f   :  { %v1879_v55 = vadd.f32 %v2036_v53, %v1878_v54  ;;  %v2058_v56 = vpop.f32.mrb[17].mxu0 }
 0x921   :  { %v1882_v57 = vmax.f32 %v1879_v55, 0.0 }
 0x923   :  { %2064 = vmatmul.mubr.msk.f32.vlgmr.msra.gmra.mrb[16].mxu1 %vm82_vm0, %v1882_v57 }
 0x9f6   :  { %v1961_v19 = vpop.f32.mrb[16].mxu1 }
 0x9f7   :  { %v1962_v30 = vadd.f32 %v2038_v58, %v1961_v19  ;;  %v2065_v59 = vpop.f32.mrb[17].mxu1 }
 0x9f9   :  { %1966 = vst.msk [vmem:[#allocation6] sm:$0xff] %vm1965_vm3, %v1962_v30 }
 0x9fa   :  { %2443 = shalt.err (!%p2440_p12)
}
 0x9fb   :  { %s2444_s14 = scalar_lea.hbm %s2829_s8, 128 }
 0x9fc   :  { %p2445_p13 = scmp.ne.s32.totalorder %s2829_s8, %s2444_s14  ;;  %p2448_p0 = scmp.lt.u32.totalorder %s2444_s14, %s2829_s8 }
 0x9fe   :  { %p2450_p1 = pnand %p2448_p0, %p2445_p13 }
 0xa00   :  { %2453 = shalt.err (!%p2450_p1)
}
 0xa01   :  { %1976 = dma.vmem_to_hbm [thread:$0]  %s1974_s12, 128, %s2829_s8, [#allocation5]  }
 0xa02   :  { %2456 = dma.done.wait [#allocation5], 128  }
 0xa03   :  { %2457 = vsyncadd [#allocation5], 4294967168 }
 0xa04   :  { %1980 = vsyncpa [#allocation4], 1 }
 0xa05   :  { %1981 = vsyncpa [#allocation5], 1 }

</bundles_post_ra>
